<compile_context>
chip_gen: v5e
topology: v5e:2x2
jax: 0.10.0
libtpu: 0.0.40
codegen_flags: <defaults>
</compile_context>

<pallas_src>
import functools

import jax
import jax.numpy as jnp
from jax.experimental import pallas as pl
from jax.experimental.pallas import tpu as pltpu


LANE = 128
_NEG_BIG = -1e30
_VMEM_LIMIT = 32 * 1024 * 1024   # explicit scoped-VMEM budget; safe on v5e/v6e/v7x


def _round_up(x, m):
    return ((x + m - 1) // m) * m


def _choose_tile(n_pad):
    # n_pad is always a multiple of 128; pick the biggest tile that divides it.
    for t in (512, 256, 128):
        if n_pad % t == 0:
            return t
    return 128


def _pad2(x, rows, cols):
    return jnp.pad(x, ((0, rows - x.shape[0]), (0, cols - x.shape[1])))


# ------------------------------ linear kernel ------------------------------ #

def _linear_kernel(x_ref, w_ref, b_ref, o_ref, *, relu):
    # y = x @ W + b   (W stored as (in, out), i.e. PyTorch W^T); f32 accumulation.
    y = jnp.dot(x_ref[...], w_ref[...], preferred_element_type=jnp.float32)
    y = y + b_ref[...]
    if relu:
        y = jnp.maximum(y, 0.0)
    o_ref[...] = y.astype(o_ref.dtype)


def linear(x_pad, w_pad, b_pad, *, relu=False, out_dtype=jnp.float32):
    n_pad, in_pad = x_pad.shape
    out_pad = w_pad.shape[1]
    tm = _choose_tile(n_pad)
    kern = functools.partial(_linear_kernel, relu=relu)
    return pl.pallas_call(
        kern,
        out_shape=jax.ShapeDtypeStruct((n_pad, out_pad), out_dtype),
        grid=(n_pad // tm,),
        in_specs=[
            pl.BlockSpec((tm, in_pad), lambda i: (i, 0)),         # row tile of x
            pl.BlockSpec((in_pad, out_pad), lambda i: (0, 0)),    # resident weights
            pl.BlockSpec((1, out_pad), lambda i: (0, 0)),         # bias
        ],
        out_specs=pl.BlockSpec((tm, out_pad), lambda i: (i, 0)),
        compiler_params=pltpu.CompilerParams(
            dimension_semantics=("parallel",),
            vmem_limit_bytes=_VMEM_LIMIT,
        ),
    )(x_pad, w_pad, b_pad)


# ----------------------------- AGNNConv kernel ------------------------------ #

def _agnn_conv_kernel(beta_ref, hq_ref, hk_ref, adj_ref, o_ref, m_sc, l_sc, acc_sc):
    k = pl.program_id(1)

    @pl.when(k == 0)
    def _():
        m_sc[...] = jnp.full_like(m_sc, -jnp.inf)
        l_sc[...] = jnp.zeros_like(l_sc)
        acc_sc[...] = jnp.zeros_like(acc_sc)

    beta = beta_ref[0, 0]

    hk = hk_ref[...]                              # bf16 src features (aggregation input)
    hqf = hq_ref[...].astype(jnp.float32)
    hkf = hk.astype(jnp.float32)

    # L2-normalize rows in f32 (zero feature padding contributes nothing to sumsq);
    # beta is folded into the query scale (t*d multiply instead of t*t).
    inv_q = jax.lax.rsqrt(jnp.maximum(jnp.sum(hqf * hqf, axis=-1, keepdims=True), 1e-24))
    inv_k = jax.lax.rsqrt(jnp.maximum(jnp.sum(hkf * hkf, axis=-1, keepdims=True), 1e-24))
    q = (hqf * (inv_q * beta)).astype(jnp.bfloat16)
    kk = (hkf * inv_k).astype(jnp.bfloat16)

    # beta * cosine similarity: contract last dims of both operands (no transpose),
    # bf16 MXU inputs with f32 accumulation.
    s = jax.lax.dot_general(
        q, kk,
        dimension_numbers=(((1,), (1,)), ((), ())),
        preferred_element_type=jnp.float32)
    # int8 adjacency tile (0/1) -> additive -inf mask via vselect (VPU).
    s = jnp.where(adj_ref[...] > 0, s, _NEG_BIG)

    # Online (flash-style) softmax accumulation over src tiles, f32 throughout.
    m_prev = m_sc[...]
    m_new = jnp.maximum(m_prev, jnp.max(s, axis=-1, keepdims=True))
    alpha = jnp.exp(m_prev - m_new)
    p = jnp.exp(s - m_new)
    l_sc[...] = alpha * l_sc[...] + jnp.sum(p, axis=-1, keepdims=True)
    acc_sc[...] = alpha * acc_sc[...] + jnp.dot(
        p.astype(jnp.bfloat16), hk, preferred_element_type=jnp.float32)
    m_sc[...] = m_new

    @pl.when(k == pl.num_programs(1) - 1)
    def _():
        inv_l = pl.reciprocal(jnp.maximum(l_sc[...], 1e-30), approx=True)
        o_ref[...] = (acc_sc[...] * inv_l).astype(o_ref.dtype)


def agnn_conv(h_pad, adj_i8, beta):
    n_pad, d_pad = h_pad.shape
    t = _choose_tile(n_pad)
    beta_arr = jnp.asarray(beta, jnp.float32).reshape(1, 1)
    return pl.pallas_call(
        _agnn_conv_kernel,
        out_shape=jax.ShapeDtypeStruct((n_pad, d_pad), h_pad.dtype),
        grid=(n_pad // t, n_pad // t),
        in_specs=[
            pl.BlockSpec(memory_space=pltpu.SMEM),             # beta scalar
            pl.BlockSpec((t, d_pad), lambda i, k: (i, 0)),     # dst-row features (bf16)
            pl.BlockSpec((t, d_pad), lambda i, k: (k, 0)),     # src-row features (bf16)
            pl.BlockSpec((t, t), lambda i, k: (i, k)),         # adjacency tile (int8)
        ],
        out_specs=pl.BlockSpec((t, d_pad), lambda i, k: (i, 0)),
        scratch_shapes=[
            pltpu.VMEM((t, 1), jnp.float32),       # running max   m
            pltpu.VMEM((t, 1), jnp.float32),       # running denom l
            pltpu.VMEM((t, d_pad), jnp.float32),   # running numer acc
        ],
        compiler_params=pltpu.CompilerParams(
            dimension_semantics=("parallel", "arbitrary"),
            vmem_limit_bytes=_VMEM_LIMIT,
        ),
    )(beta_arr, h_pad, h_pad, adj_i8)


# ------------------------------ model wrapper ------------------------------- #

def init_params(key, in_feats, size_hidden, n_classes, n_layers, init_beta):
    k1, k2, k3, k4 = jax.random.split(key, 4)
    return {
        "w_proj": jax.random.normal(k1, (in_feats, size_hidden), jnp.float32) * 0.1,
        "b_proj": jax.random.normal(k2, (1, size_hidden), jnp.float32) * 0.01,
        "w_cls": jax.random.normal(k3, (size_hidden, n_classes), jnp.float32) * 0.1,
        "b_cls": jax.random.normal(k4, (1, n_classes), jnp.float32) * 0.01,
        # learn_beta just makes beta a trainable parameter; it is init_beta at init time.
        "betas": [jnp.float32(init_beta) for _ in range(n_layers)],
    }


def agnn_forward(params, adj, features):
    n, in_feats = features.shape
    hidden = params["w_proj"].shape[1]
    n_classes = params["w_cls"].shape[1]

    n_pad = _round_up(max(n, LANE), LANE)
    in_pad = _round_up(in_feats, LANE)
    hid_pad = _round_up(hidden, LANE)
    cls_pad = _round_up(n_classes, LANE)

    # Lane-dense zero padding (zeros are inert for matmul / L2 norm / softmax).
    x_p = _pad2(features, n_pad, in_pad)
    w_proj_p = _pad2(params["w_proj"], in_pad, hid_pad)
    b_proj_p = _pad2(params["b_proj"], 1, hid_pad)
    w_cls_p = _pad2(params["w_cls"], hid_pad, cls_pad)
    b_cls_p = _pad2(params["b_cls"], 1, cls_pad)

    # Adjacency prepared once (int8, 0/1) and reused by every AGNNConv layer.
    # Padded dst rows get a self-loop so their softmax denominator is never 0.
    adj_p = _pad2(adj.astype(jnp.float32), n_pad, n_pad)
    if n_pad > n:
        pad_diag = (jnp.arange(n_pad) >= n).astype(jnp.float32)
        adj_p = adj_p + jnp.eye(n_pad, dtype=jnp.float32) * pad_diag
    adj_i8 = (adj_p > 0.0).astype(jnp.int8)

    # proj: Linear + ReLU; keep node features in bf16 between layers
    # (halves the dominant feature stream; MXU consumes bf16 anyway).
    h = linear(x_p, w_proj_p, b_proj_p, relu=True, out_dtype=jnp.bfloat16)
    for beta in params["betas"]:
        h = agnn_conv(h, adj_i8, beta)                      # AGNNConv layers
    out = linear(h, w_cls_p, b_cls_p, relu=False, out_dtype=jnp.float32)
    return out[:n, :n_classes]


# ---------------------------------- main ------------------------------------ #

if __name__ == "__main__":
    N = 64          # number of graph nodes
    IN_FEATS = 32
    HIDDEN = 32
    N_CLASSES = 8
    N_LAYERS = 2
    INIT_BETA = 1.0

    key = jax.random.PRNGKey(0)
    k_feat, k_adj, k_params = jax.random.split(key, 3)

    features = jax.random.normal(k_feat, (N, IN_FEATS), jnp.float32)

    # random sparse-ish graph + self loops so every node has in-degree >= 1
    # (AGNNConv is constructed with allow_zero_in_degree=False)
    adj = (jax.random.uniform(k_adj, (N, N)) < 0.1).astype(jnp.float32)
    adj = jnp.maximum(adj, jnp.eye(N, dtype=jnp.float32))

    params = init_params(k_params, IN_FEATS, HIDDEN, N_CLASSES, N_LAYERS, INIT_BETA)

    out = agnn_forward(params, adj, features)
    out = jax.block_until_ready(out)
    assert out.shape == (N, N_CLASSES)
    assert bool(jnp.all(jnp.isfinite(out)))
    print("KERNEL_OK")
</pallas_src>

<mosaic_0001>
module attributes {stable_mosaic.version = 11 : i64} {
  func.func @_linear_kernel(%arg0: i32, %arg1: memref<128x128xf32, #tpu.memory_space<vmem>>, %arg2: memref<128x128xf32, #tpu.memory_space<vmem>>, %arg3: memref<1x128xf32, #tpu.memory_space<vmem>>, %arg4: memref<128x128xbf16, #tpu.memory_space<vmem>>) attributes {dimension_semantics = [#tpu.dimension_semantics<parallel>], iteration_bounds = array<i64: 1>, scalar_prefetch = 0 : i64, scratch_operands = 0 : i64, tpu.core_type = #tpu.core_type<tc>, window_params = [{transform_indices = @transform_0, window_bounds = array<i64: 128, 128>}, {pipeline_mode = #tpu.pipeline_mode<synchronous>, transform_indices = @transform_1, window_bounds = array<i64: 128, 128>}, {pipeline_mode = #tpu.pipeline_mode<synchronous>, transform_indices = @transform_2, window_bounds = array<i64: 1, 128>}, {transform_indices = @transform_3, window_bounds = array<i64: 128, 128>}]} {
    %c0 = arith.constant 0 : index
    %c0_0 = arith.constant 0 : index
    %0 = vector.load %arg1[%c0, %c0_0] : memref<128x128xf32, #tpu.memory_space<vmem>>, vector<128x128xf32>
    %c0_1 = arith.constant 0 : index
    %c0_2 = arith.constant 0 : index
    %1 = vector.load %arg2[%c0_1, %c0_2] : memref<128x128xf32, #tpu.memory_space<vmem>>, vector<128x128xf32>
    %cst = arith.constant dense<0.000000e+00> : vector<128x128xf32>
    %2 = tpu.matmul %0, %1, %cst {dimension_numbers = #tpu.dot_dimension_numbers<[1], [0], [0], [1], [0, 0, 1, 1], [], []>} : vector<128x128xf32>, vector<128x128xf32>, vector<128x128xf32> -> vector<128x128xf32>
    %c0_3 = arith.constant 0 : index
    %c0_4 = arith.constant 0 : index
    %3 = vector.load %arg3[%c0_3, %c0_4] : memref<1x128xf32, #tpu.memory_space<vmem>>, vector<1x128xf32>
    %4 = vector.broadcast %3 : vector<1x128xf32> to vector<128x128xf32>
    %5 = arith.addf %2, %4 : vector<128x128xf32>
    %cst_5 = arith.constant 0.000000e+00 : f32
    %6 = vector.broadcast %cst_5 : f32 to vector<128x128xf32>
    %7 = arith.maximumf %5, %6 : vector<128x128xf32>
    %8 = arith.truncf %7 : vector<128x128xf32> to vector<128x128xbf16>
    %c0_6 = arith.constant 0 : index
    %c0_7 = arith.constant 0 : index
    %9 = vector.load %arg4[%c0_6, %c0_7] : memref<128x128xbf16, #tpu.memory_space<vmem>>, vector<128x128xbf16>
    tpu.vector_store %arg4[%c0_6, %c0_7], %8 {strides = array<i32>} : memref<128x128xbf16, #tpu.memory_space<vmem>>, vector<128x128xbf16>,
    return
  }
  func.func @transform_0(%arg0: i32) -> (i32, i32) {
    %c0_i32 = arith.constant 0 : i32
    %c0_i32_0 = arith.constant 0 : i32
    return %arg0, %c0_i32 : i32, i32
  }
  func.func @transform_1(%arg0: i32) -> (i32, i32) {
    %c0_i32 = arith.constant 0 : i32
    %c0_i32_0 = arith.constant 0 : i32
    %c0_i32_1 = arith.constant 0 : i32
    return %c0_i32, %c0_i32_0 : i32, i32
  }
  func.func @transform_2(%arg0: i32) -> (i32, i32) {
    %c0_i32 = arith.constant 0 : i32
    %c0_i32_0 = arith.constant 0 : i32
    %c0_i32_1 = arith.constant 0 : i32
    return %c0_i32, %c0_i32_0 : i32, i32
  }
  func.func @transform_3(%arg0: i32) -> (i32, i32) {
    %c0_i32 = arith.constant 0 : i32
    %c0_i32_0 = arith.constant 0 : i32
    return %arg0, %c0_i32 : i32, i32
  }
}

</mosaic_0001>

<bundles_post_ra>
// kernel: tpu_custom_call.1
= control target key start
LH: loop header
LB: loop body
LE: loop exit
PB: predicated region body
PF: predicated region fallthrough
CT: control target
= control target key end

     0   :  { %8 = vsyncpa [#allocation3], 0  ;;  %s436_s0 = inlined_call_operand.hbm [shape: f32[128,128], index: 0, kind: input, shape index: {}]   ;;  %s437_s1 = inlined_call_operand.hbm [shape: f32[128,128], index: 1, kind: input, shape index: {}]   ;;  %s438_s2 = inlined_call_operand.vmem [shape: f32[1,128], index: 2, kind: input, shape index: {}]   ;;  %s439_s3 = inlined_call_operand.hbm [shape: bf16[128,128], index: 3, kind: output, shape index: {}]  }
   0x1   :  { %9 = vsyncpa [#allocation6], 0 }
   0x2   :  { %10 = vsyncpa [#allocation4], 0  ;;  %s15_s14 = sshll.u32 %s436_s0, 4  ;;  %s397_s15 = smov [#allocation2]   ;;  %s16_s14 = int_to_ptr.hbm [resolvable:$true] %s15_s14 }
   0x3   :  { %s17_s16 = sshll.u32 %s397_s15, 4  ;;  %s28_s19 = sshll.u32 %s437_s1, 4  ;;  %s18_s16 = int_to_ptr.vmem [resolvable:$true] %s17_s16  ;;  %s29_s19 = int_to_ptr.hbm [resolvable:$true] %s28_s19 }
   0x4   :  { %s398_s20 = smov 128   ;;  %s399_s21 = smov 8  }
   0x5   :  { %23 = dma.hbm_to_vmem [thread:$0]  %s16_s14, 2048, %s18_s16, [#allocation3], %s398_s20, %s398_s20, %s399_s21  }
   0x6   :  { %s400_s22 = smov [#allocation5]  }
   0x7   :  { %s30_s23 = sshll.u32 %s400_s22, 4  ;;  %s31_s23 = int_to_ptr.vmem [resolvable:$true] %s30_s23 }
   0x8   :  { %36 = dma.hbm_to_vmem [thread:$0]  %s29_s19, 2048, %s31_s23, [#allocation6], %s398_s20, %s398_s20, %s399_s21  }
   0x9   :  { %391 = dma.done.wait [#allocation3], 2048  }
   0xa   :  { %392 = vsyncadd [#allocation3], 4294965248 }
   0xb   :  { %393 = dma.done.wait [#allocation6], 2048  }
   0xc   :  { %394 = vsyncadd [#allocation6], 4294965248  ;;  %v78_v0 = vld [vmem:[#allocation5 + $0x78] sm:$0xff]  ;;  %v77_v1 = vld [vmem:[#allocation5 + $0x70] sm:$0xff]  ;;  %s202_s27 = sshll.u32 %s439_s3, 4  ;;  %s402_s28 = smov 64   ;;  %s203_s27 = int_to_ptr.hbm [resolvable:$true] %s202_s27 }
   0xd   :  { %83 = vmatpush.msra.mxu0 %v78_v0  ;;  %263 = vmatpush.msra.mxu1 %v78_v0  ;;  %v76_v2 = vld [vmem:[#allocation5 + $0x68] sm:$0xff]  ;;  %v75_v3 = vld [vmem:[#allocation5 + $0x60] sm:$0xff]  ;;  %v74_v4 = vld [vmem:[#allocation5 + $0x58] sm:$0xff]  ;;  %s403_s29 = smov 4  }
   0xe   :  { %264 = vmatpush.msra.mxu2 %v78_v0  ;;  %265 = vmatpush.msra.mxu3 %v78_v0  ;;  %v73_v5 = vld [vmem:[#allocation5 + $0x50] sm:$0xff]  ;;  %v72_v6 = vld [vmem:[#allocation5 + $0x48] sm:$0xff]  ;;  %v71_v7 = vld [vmem:[#allocation5 + $0x40] sm:$0xff] }
   0xf   :  { %84 = vmatpush.msra.mxu0 %v77_v1  ;;  %266 = vmatpush.msra.mxu1 %v77_v1  ;;  %v70_v8 = vld [vmem:[#allocation5 + $0x38] sm:$0xff]  ;;  %v69_v9 = vld [vmem:[#allocation5 + $0x30] sm:$0xff]  ;;  %v68_v10 = vld [vmem:[#allocation5 + $0x28] sm:$0xff] }
  0x10   :  { %267 = vmatpush.msra.mxu2 %v77_v1  ;;  %268 = vmatpush.msra.mxu3 %v77_v1  ;;  %v67_v11 = vld [vmem:[#allocation5 + $0x20] sm:$0xff]  ;;  %v66_v12 = vld [vmem:[#allocation5 + $0x18] sm:$0xff]  ;;  %v65_v13 = vld [vmem:[#allocation5 + $0x10] sm:$0xff] }
  0x11   :  { %85 = vmatpush.msra.mxu0 %v76_v2  ;;  %269 = vmatpush.msra.mxu1 %v76_v2  ;;  %v64_v14 = vld [vmem:[#allocation5 + $0x8] sm:$0xff]  ;;  %v63_v15 = vld [vmem:[#allocation5] sm:$0xff]  ;;  %v49_v24 = vld [vmem:[#allocation2 + $0x10] sm:$0xff] }
  0x12   :  { %270 = vmatpush.msra.mxu2 %v76_v2  ;;  %271 = vmatpush.msra.mxu3 %v76_v2  ;;  %v47_v16 = vld [vmem:[#allocation2] sm:$0xff]  ;;  %v48_v20 = vld [vmem:[#allocation2 + $0x8] sm:$0xff]  ;;  %v53_v25 = vld [vmem:[#allocation2 + $0x30] sm:$0xff] }
  0x13   :  { %86 = vmatpush.msra.mxu0 %v75_v3  ;;  %272 = vmatpush.msra.mxu1 %v75_v3  ;;  %v51_v17 = vld [vmem:[#allocation2 + $0x20] sm:$0xff]  ;;  %v52_v21 = vld [vmem:[#allocation2 + $0x28] sm:$0xff]  ;;  %v57_v26 = vld [vmem:[#allocation2 + $0x50] sm:$0xff] }
  0x14   :  { %273 = vmatpush.msra.mxu2 %v75_v3  ;;  %274 = vmatpush.msra.mxu3 %v75_v3  ;;  %v55_v18 = vld [vmem:[#allocation2 + $0x40] sm:$0xff]  ;;  %v56_v22 = vld [vmem:[#allocation2 + $0x48] sm:$0xff]  ;;  %v61_v27 = vld [vmem:[#allocation2 + $0x70] sm:$0xff] }
  0x15   :  { %87 = vmatpush.msra.mxu0 %v74_v4  ;;  %275 = vmatpush.msra.mxu1 %v74_v4  ;;  %v59_v19 = vld [vmem:[#allocation2 + $0x60] sm:$0xff]  ;;  %v60_v23 = vld [vmem:[#allocation2 + $0x68] sm:$0xff]  ;;  %v50_v28 = vld [vmem:[#allocation2 + $0x18] sm:$0xff] }
  0x16   :  { %276 = vmatpush.msra.mxu2 %v74_v4  ;;  %277 = vmatpush.msra.mxu3 %v74_v4  ;;  %v54_v29 = vld [vmem:[#allocation2 + $0x38] sm:$0xff]  ;;  %v318_v34 = vld [vmem:[%s438_s2] ss:$0 sm:$0xff]  ;;  %s401_s2 = smov [#allocation7]  }
  0x17   :  { %88 = vmatpush.msra.mxu0 %v73_v5  ;;  %278 = vmatpush.msra.mxu1 %v73_v5  ;;  %v58_v30 = vld [vmem:[#allocation2 + $0x58] sm:$0xff]  ;;  %s200_s24 = sshll.u32 %s401_s2, 4  ;;  %s201_s24 = int_to_ptr.vmem [resolvable:$true] %s200_s24 }
  0x18   :  { %279 = vmatpush.msra.mxu2 %v73_v5  ;;  %280 = vmatpush.msra.mxu3 %v73_v5  ;;  %v62_v31 = vld [vmem:[#allocation2 + $0x78] sm:$0xff] }
  0x19   :  { %89 = vmatpush.msra.mxu0 %v72_v6  ;;  %281 = vmatpush.msra.mxu1 %v72_v6 }
  0x1a   :  { %282 = vmatpush.msra.mxu2 %v72_v6  ;;  %283 = vmatpush.msra.mxu3 %v72_v6 }
  0x1b   :  { %90 = vmatpush.msra.mxu0 %v71_v7  ;;  %284 = vmatpush.msra.mxu1 %v71_v7 }
  0x1c   :  { %285 = vmatpush.msra.mxu2 %v71_v7  ;;  %286 = vmatpush.msra.mxu3 %v71_v7 }
  0x1d   :  { %91 = vmatpush.msra.mxu0 %v70_v8  ;;  %287 = vmatpush.msra.mxu1 %v70_v8 }
  0x1e   :  { %288 = vmatpush.msra.mxu2 %v70_v8  ;;  %289 = vmatpush.msra.mxu3 %v70_v8 }
  0x1f   :  { %92 = vmatpush.msra.mxu0 %v69_v9  ;;  %290 = vmatpush.msra.mxu1 %v69_v9 }
  0x20   :  { %291 = vmatpush.msra.mxu2 %v69_v9  ;;  %292 = vmatpush.msra.mxu3 %v69_v9 }
  0x21   :  { %93 = vmatpush.msra.mxu0 %v68_v10  ;;  %293 = vmatpush.msra.mxu1 %v68_v10 }
  0x22   :  { %294 = vmatpush.msra.mxu2 %v68_v10  ;;  %295 = vmatpush.msra.mxu3 %v68_v10 }
  0x23   :  { %94 = vmatpush.msra.mxu0 %v67_v11  ;;  %296 = vmatpush.msra.mxu1 %v67_v11 }
  0x24   :  { %297 = vmatpush.msra.mxu2 %v67_v11  ;;  %298 = vmatpush.msra.mxu3 %v67_v11 }
  0x25   :  { %95 = vmatpush.msra.mxu0 %v66_v12  ;;  %299 = vmatpush.msra.mxu1 %v66_v12 }
  0x26   :  { %300 = vmatpush.msra.mxu2 %v66_v12  ;;  %301 = vmatpush.msra.mxu3 %v66_v12 }
  0x27   :  { %96 = vmatpush.msra.mxu0 %v65_v13  ;;  %302 = vmatpush.msra.mxu1 %v65_v13 }
  0x28   :  { %303 = vmatpush.msra.mxu2 %v65_v13  ;;  %304 = vmatpush.msra.mxu3 %v65_v13 }
  0x29   :  { %97 = vmatpush.msra.mxu0 %v64_v14  ;;  %305 = vmatpush.msra.mxu1 %v64_v14 }
  0x2a   :  { %306 = vmatpush.msra.mxu2 %v64_v14  ;;  %307 = vmatpush.msra.mxu3 %v64_v14 }
  0x2b   :  { %98 = vmatpush.msra.mxu0 %v63_v15  ;;  %308 = vmatpush.msra.mxu1 %v63_v15 }
  0x2c   :  { %309 = vmatpush.msra.mxu2 %v63_v15  ;;  %310 = vmatpush.msra.mxu3 %v63_v15 }
  0x2d   :  { %99 = vmatmul.f32.vlgmr.msra.gmra.mxu0 %v47_v16  ;;  %111 = vmatmul.f32.vlgmr.msra.gmra.mxu1 %v51_v17 }
  0x2e   :  { %123 = vmatmul.f32.vlgmr.msra.gmra.mxu2 %v55_v18  ;;  %135 = vmatmul.f32.vlgmr.msra.gmra.mxu3 %v59_v19 }
  0x35   :  { %102 = vmatmul.f32.gmra.mxu0 %v48_v20  ;;  %114 = vmatmul.f32.gmra.mxu1 %v52_v21 }
  0x36   :  { %126 = vmatmul.f32.gmra.mxu2 %v56_v22  ;;  %138 = vmatmul.f32.gmra.mxu3 %v60_v23 }
  0x3d   :  { %105 = vmatmul.f32.gmra.mxu0 %v49_v24  ;;  %117 = vmatmul.f32.gmra.mxu1 %v53_v25 }
  0x3e   :  { %129 = vmatmul.f32.gmra.mxu2 %v57_v26  ;;  %141 = vmatmul.f32.gmra.mxu3 %v61_v27 }
  0x45   :  { %108 = vmatmul.f32.gmra.mxu0 %v50_v28  ;;  %120 = vmatmul.f32.gmra.mxu1 %v54_v29 }
  0x46   :  { %132 = vmatmul.f32.gmra.mxu2 %v58_v30  ;;  %144 = vmatmul.f32.gmra.mxu3 %v62_v31 }
  0xaa   :  { %v100_v32 = vpop.f32.mrf.mxu0  ;;  %v112_v33 = vpop.f32.mrf.mxu1 }
  0xab   :  { %v101_v35 = vadd.f32 %v318_v34, %v100_v32  ;;  %v113_v36 = vadd.f32 %v318_v34, %v112_v33 }
  0xad   :  { %v148_v43 = vmax.f32 %v101_v35, 0.0  ;;  %v152_v44 = vmax.f32 %v113_v36, 0.0 }
  0xb1   :  { %v124_v37 = vpop.f32.mrf.mxu2  ;;  %v136_v38 = vpop.f32.mrf.mxu3 }
  0xb2   :  { %v103_v39 = vpop.f32.mrf.mxu0  ;;  %v115_v40 = vpop.f32.mrf.mxu1  ;;  %v125_v49 = vadd.f32 %v318_v34, %v124_v37  ;;  %v137_v50 = vadd.f32 %v318_v34, %v136_v38 }
  0xb3   :  { %v104_v41 = vadd.f32 %v318_v34, %v103_v39  ;;  %v116_v42 = vadd.f32 %v318_v34, %v115_v40 }
  0xb4   :  { %v156_v57 = vmax.f32 %v125_v49, 0.0  ;;  %v160_v58 = vmax.f32 %v137_v50, 0.0 }
  0xb5   :  { %v149_v45 = vmax.f32 %v104_v41, 0.0  ;;  %v153_v46 = vmax.f32 %v116_v42, 0.0 }
  0xb7   :  { %v219_v47 = vpack.c.bf16 %v149_v45, %v148_v43  ;;  %v229_v48 = vpack.c.bf16 %v153_v46, %v152_v44 }
  0xb9   :  { %220 = vst [vmem:[#allocation7] sm:$0xff] %v219_v47   ;;  %v127_v51 = vpop.f32.mrf.mxu2  ;;  %v139_v52 = vpop.f32.mrf.mxu3 }
  0xba   :  { %257 = vst [vmem:[#allocation7 + $0x10] sm:$0xff] %v229_v48   ;;  %v128_v53 = vadd.f32 %v318_v34, %v127_v51  ;;  %v140_v54 = vadd.f32 %v318_v34, %v139_v52  ;;  %v106_v55 = vpop.f32.mrf.mxu0  ;;  %v118_v56 = vpop.f32.mrf.mxu1 }
  0xbb   :  { %v107_v63 = vadd.f32 %v318_v34, %v106_v55  ;;  %v119_v0 = vadd.f32 %v318_v34, %v118_v56 }
  0xbc   :  { %v157_v59 = vmax.f32 %v128_v53, 0.0  ;;  %v161_v60 = vmax.f32 %v140_v54, 0.0 }
  0xbd   :  { %v150_v7 = vmax.f32 %v107_v63, 0.0  ;;  %v154_v8 = vmax.f32 %v119_v0, 0.0 }
  0xbe   :  { %v239_v61 = vpack.c.bf16 %v157_v59, %v156_v57  ;;  %v249_v62 = vpack.c.bf16 %v161_v60, %v160_v58 }
  0xc0   :  { %259 = vst [vmem:[#allocation7 + $0x20] sm:$0xff] %v239_v61  }
  0xc1   :  { %261 = vst [vmem:[#allocation7 + $0x30] sm:$0xff] %v249_v62   ;;  %v130_v1 = vpop.f32.mrf.mxu2  ;;  %v142_v2 = vpop.f32.mrf.mxu3 }
  0xc2   :  { %v109_v3 = vpop.f32.mrf.mxu0  ;;  %v121_v4 = vpop.f32.mrf.mxu1  ;;  %v131_v13 = vadd.f32 %v318_v34, %v130_v1  ;;  %v143_v14 = vadd.f32 %v318_v34, %v142_v2 }
  0xc3   :  { %v110_v5 = vadd.f32 %v318_v34, %v109_v3  ;;  %v122_v6 = vadd.f32 %v318_v34, %v121_v4 }
  0xc4   :  { %v158_v19 = vmax.f32 %v131_v13, 0.0  ;;  %v162_v20 = vmax.f32 %v143_v14, 0.0 }
  0xc5   :  { %v151_v9 = vmax.f32 %v110_v5, 0.0  ;;  %v155_v10 = vmax.f32 %v122_v6, 0.0 }
  0xc7   :  { %v224_v11 = vpack.c.bf16 %v151_v9, %v150_v7  ;;  %v234_v12 = vpack.c.bf16 %v155_v10, %v154_v8 }
  0xc9   :  { %256 = vst [vmem:[#allocation7 + $0x8] sm:$0xff] %v224_v11   ;;  %v133_v15 = vpop.f32.mrf.mxu2  ;;  %v145_v16 = vpop.f32.mrf.mxu3 }
  0xca   :  { %258 = vst [vmem:[#allocation7 + $0x18] sm:$0xff] %v234_v12   ;;  %v134_v17 = vadd.f32 %v318_v34, %v133_v15  ;;  %v146_v18 = vadd.f32 %v318_v34, %v145_v16 }
  0xcc   :  { %v159_v21 = vmax.f32 %v134_v17, 0.0  ;;  %v163_v22 = vmax.f32 %v146_v18, 0.0 }
  0xce   :  { %v244_v23 = vpack.c.bf16 %v159_v21, %v158_v19  ;;  %v254_v24 = vpack.c.bf16 %v163_v22, %v162_v20 }
  0xd0   :  { %260 = vst [vmem:[#allocation7 + $0x28] sm:$0xff] %v244_v23  }
  0xd1   :  { %262 = vst [vmem:[#allocation7 + $0x38] sm:$0xff] %v254_v24  }
  0xd2   :  { %208 = dma.vmem_to_hbm [thread:$0]  %s201_s24, 1024, %s203_s27, [#allocation4], %s402_s28, %s402_s28, %s403_s29  }
  0xd3   :  { %395 = dma.done.wait [#allocation4], 1024  }
  0xd4   :  { %396 = vsyncadd [#allocation4], 4294966272 }
  0xd5   :  { %213 = vsyncpa [#allocation3], 1 }
  0xd6   :  { %214 = vsyncpa [#allocation6], 1 }
  0xd7   :  { %215 = vsyncpa [#allocation4], 1 }

</bundles_post_ra>
